<compile_context>
chip_gen: v7x
topology: tpu7x:2x2x1
jax: 0.10.0
libtpu: 0.0.40
codegen_flags: <defaults>
</compile_context>

<pallas_src>
import math

import numpy as np
import jax
import jax.numpy as jnp
from jax.experimental import pallas as pl
from jax.experimental.pallas import tpu as pltpu


# ----------------------------------------------------------------------------
# Parameter construction (deterministic, pure numpy) — mirrors the PyTorch
# __init__ which builds SH2SignalMat from scipy.special.sph_harm.
# ----------------------------------------------------------------------------
def _assoc_legendre(l, m, x):
    """Associated Legendre P_l^m(x), Condon-Shortley phase (scipy convention)."""
    pmm = 1.0
    if m > 0:
        somx2 = math.sqrt(max(0.0, (1.0 - x) * (1.0 + x)))
        fact = 1.0
        for _ in range(m):
            pmm *= -fact * somx2
            fact += 2.0
    if l == m:
        return pmm
    pmmp1 = x * (2.0 * m + 1.0) * pmm
    if l == m + 1:
        return pmmp1
    pll = 0.0
    for ll in range(m + 2, l + 1):
        pll = ((2.0 * ll - 1.0) * x * pmmp1 - (ll + m - 1.0) * pmm) / (ll - m)
        pmm = pmmp1
        pmmp1 = pll
    return pll


def _sph_harm(m, l, theta_az, phi_pol):
    """scipy.special.sph_harm(m, l, theta, phi) equivalent (complex)."""
    norm = math.sqrt(
        (2.0 * l + 1.0) / (4.0 * math.pi)
        * math.factorial(l - m) / math.factorial(l + m)
    )
    p = _assoc_legendre(l, m, math.cos(phi_pol))
    return norm * p * complex(math.cos(m * theta_az), math.sin(m * theta_az))


def _cart2sph(x, y, z):
    r = math.sqrt(x * x + y * y + z * z)
    phi = math.atan2(y, x)                      # azimuth
    theta = math.acos(z / r) if r > 0 else 0.0  # polar angle
    return phi, theta, r


def build_sh2signal_mat(sh_order, gradients):
    num_gradients = gradients.shape[0]
    num_coefficients = int((sh_order + 1) * (sh_order / 2 + 1))
    mat = np.zeros((num_coefficients, num_gradients), dtype=np.float64)
    for g in range(num_gradients):
        gx, gy, gz = (float(gradients[g, 0]), float(gradients[g, 1]),
                      float(gradients[g, 2]))
        phi, theta, _ = _cart2sph(gx, gy, gz)
        c = 0
        for l in range(0, sh_order + 1, 2):
            for m in range(-l, l + 1):
                y = _sph_harm(abs(m), l, phi, theta)
                if m < 0:
                    mat[c, g] = y.real * math.sqrt(2.0)
                elif m == 0:
                    mat[c, g] = y.real
                else:
                    mat[c, g] = y.imag * math.sqrt(2.0)
                c += 1
    return mat.astype(np.float32)


# ----------------------------------------------------------------------------
# Tiling heuristics
# ----------------------------------------------------------------------------
def _default_max_v_tile():
    """Per-generation max lanes per voxel tile (conservative on v5e/older)."""
    try:
        kind = jax.devices()[0].device_kind.lower()
    except Exception:
        kind = ""
    if ("v6" in kind) or ("v7" in kind) or ("7x" in kind):
        return 65536
    return 32768  # v5e and older: keep double-buffered blocks small


def _select_tiling(BS, C, G, V, x_itemsize, o_itemsize, max_v_tile):
    """Pick (bs_blk, vt): (b*s) slices per step and voxel-tile lanes."""
    per_voxel_bytes = C * x_itemsize + G * o_itemsize

    if V > max_v_tile:
        # Prefer the largest multiple of 128 <= max_v_tile that divides V so
        # the last voxel tile is never ragged (no masked vst on the output).
        vt = 0
        t = (max_v_tile // 128) * 128
        while t >= 128:
            if V % t == 0:
                vt = t
                break
            t -= 128
        if vt == 0:
            vt = max_v_tile  # ragged last tile; Pallas boundary-masks it
        return 1, vt

    # Small-volume path: full voxel extent per step, and block several (b*s)
    # slices per step so each grid step moves a few MiB of HBM rather than a
    # tiny DMA dominated by per-step pipeline overhead.
    vt = V
    per_slice = V * per_voxel_bytes
    want = max(1, (4 << 20) // max(per_slice, 1))
    if BS >= 2:
        # keep >= 2 steps on the leading parallel axis so both v7x TCs work
        want = min(want, max(1, BS // 2))
    want = min(want, BS)
    bs_blk = 1
    for d in range(1, BS + 1):           # largest divisor of BS <= want
        if BS % d == 0 and d <= want:
            bs_blk = d
    return bs_blk, vt


# ----------------------------------------------------------------------------
# Pallas kernel: lane-dense (G, C) @ (C, Vt) matmuls per grid step
# ----------------------------------------------------------------------------
def _sh_matmul_kernel(w_ref, x_ref, o_ref):
    # w: (G, C)        constant across the grid (index_map always (0, 0))
    # x: (bs_blk, C, Vt)  SH coefficients for a block of (b*s) slices
    # o: (bs_blk, G, Vt)  reconstructed signals
    w = w_ref[...]

    def body(i, carry):
        o_ref[i] = jnp.dot(
            w, x_ref[i], preferred_element_type=jnp.float32
        ).astype(o_ref.dtype)
        return carry

    jax.lax.fori_loop(0, x_ref.shape[0], body, 0, unroll=True)


def _sh2signal_matmul(w_t, x3d, *, max_v_tile=None):
    """w_t: (G, C) float32, x3d: (B*S, C, V) -> (B*S, G, V) in x3d.dtype."""
    BS, C, V = x3d.shape
    G = w_t.shape[0]
    out_dtype = x3d.dtype
    x_itemsize = jnp.dtype(x3d.dtype).itemsize
    o_itemsize = jnp.dtype(out_dtype).itemsize

    if max_v_tile is None:
        max_v_tile = _default_max_v_tile()

    bs_blk, vt = _select_tiling(BS, C, G, V, x_itemsize, o_itemsize, max_v_tile)
    n_bs = pl.cdiv(BS, bs_blk)
    n_v = pl.cdiv(V, vt)

    # Explicit scoped-VMEM budget: double-buffered input/output blocks plus
    # weight plus compiler-scratch slack.  Portable across v5e/v6e/v7x
    # scoped-VMEM defaults.
    x_block_bytes = bs_blk * C * vt * x_itemsize
    o_block_bytes = bs_blk * G * vt * o_itemsize
    w_block_bytes = G * C * jnp.dtype(w_t.dtype).itemsize
    vmem_limit = 2 * (x_block_bytes + o_block_bytes + w_block_bytes) + (8 << 20)
    vmem_limit = int(min(max(vmem_limit, 24 << 20), 48 << 20))

    flops = 2 * BS * V * C * G
    bytes_accessed = BS * V * (C * x_itemsize + G * o_itemsize) + G * C * 4

    return pl.pallas_call(
        _sh_matmul_kernel,
        out_shape=jax.ShapeDtypeStruct((BS, G, V), out_dtype),
        grid_spec=pltpu.PrefetchScalarGridSpec(
            num_scalar_prefetch=0,
            # (b*s) axis leading (v7x core split), voxel axis innermost
            # (contiguous HBM streaming through each (bs, C, V) slab).
            grid=(n_bs, n_v),
            in_specs=[
                pl.BlockSpec((G, C), lambda b, v: (0, 0)),            # weight
                pl.BlockSpec((bs_blk, C, vt), lambda b, v: (b, 0, v)),  # x
            ],
            out_specs=pl.BlockSpec((bs_blk, G, vt), lambda b, v: (b, 0, v)),
        ),
        compiler_params=pltpu.CompilerParams(
            dimension_semantics=("parallel", "parallel"),
            vmem_limit_bytes=vmem_limit,
        ),
        cost_estimate=pl.CostEstimate(
            flops=int(flops), transcendentals=0,
            bytes_accessed=int(bytes_accessed)),
    )(w_t, x3d)


# ----------------------------------------------------------------------------
# Module wrapper
# ----------------------------------------------------------------------------
class SH2SignalPallas:
    def __init__(self, sh_order, gradients):
        self.sh_order = sh_order
        self.num_gradients = gradients.shape[0]
        self.num_coefficients = int((sh_order + 1) * (sh_order / 2 + 1))
        mat = build_sh2signal_mat(sh_order, gradients)   # (C, G)
        self.mat = jnp.asarray(mat)                      # kept for reference
        self.mat_t = jnp.asarray(mat.T.copy())           # (G, C) for the kernel

    def __call__(self, x_in):
        B, SC, X, Y, Z = x_in.shape
        C = self.num_coefficients
        G = self.num_gradients
        if SC % C != 0:
            raise ValueError(
                f"channel dim {SC} is not a multiple of num_coefficients {C}")
        S = SC // C
        V = X * Y * Z

        # Free, layout-preserving reshapes only (no transpose, no pad):
        # (B, S*C, X, Y, Z) == (B*S, C, V) in row-major memory.
        x3d = x_in.reshape(B * S, C, V)
        y3d = _sh2signal_matmul(self.mat_t, x3d)         # (B*S, G, V), x dtype
        return y3d.reshape(B, S * G, X, Y, Z)


# ----------------------------------------------------------------------------
# Demo / self-check
# ----------------------------------------------------------------------------
if __name__ == "__main__":
    key = jax.random.PRNGKey(0)
    k1, k2 = jax.random.split(key)

    sh_order = 4                      # -> 15 coefficients
    num_gradients = 30
    num_shells = 2
    B, X, Y, Z = 2, 8, 8, 8

    # deterministic unit-norm gradient directions
    grads = np.asarray(
        jax.random.normal(k1, (num_gradients, 3), dtype=jnp.float32)
    )
    grads = grads / np.linalg.norm(grads, axis=1, keepdims=True)

    module = SH2SignalPallas(sh_order, grads)
    C = module.num_coefficients

    x_in = jax.random.normal(
        k2, (B, num_shells * C, X, Y, Z), dtype=jnp.float32
    )

    # ---- float32 path ------------------------------------------------------
    y = module(x_in)
    y = jax.block_until_ready(y)

    # reference (plain JAX) for correctness
    x_ref = x_in.reshape(B, num_shells, C, X, Y, Z)
    y_ref = jnp.einsum("bscxyz,cg->bsgxyz", x_ref, module.mat)
    y_ref = y_ref.reshape(B, num_shells * num_gradients, X, Y, Z)

    assert y.shape == (B, num_shells * num_gradients, X, Y, Z)
    assert y.dtype == x_in.dtype
    np.testing.assert_allclose(np.asarray(y), np.asarray(y_ref),
                               rtol=1e-4, atol=1e-4)

    # ---- bfloat16 path (halved HBM traffic; f32 weights + accumulation) ----
    x_bf16 = x_in.astype(jnp.bfloat16)
    y_bf16 = module(x_bf16)
    y_bf16 = jax.block_until_ready(y_bf16)
    assert y_bf16.shape == y.shape
    assert y_bf16.dtype == jnp.bfloat16
    np.testing.assert_allclose(np.asarray(y_bf16, dtype=np.float32),
                               np.asarray(y_ref),
                               rtol=5e-2, atol=5e-2)

    print("KERNEL_OK")
</pallas_src>

<mosaic_0001>
module attributes {stable_mosaic.version = 11 : i64} {
  func.func @_sh_matmul_kernel(%arg0: i32, %arg1: i32, %arg2: memref<30x15xf32, #tpu.memory_space<vmem>>, %arg3: memref<2x15x512xf32, #tpu.memory_space<vmem>>, %arg4: memref<2x30x512xf32, #tpu.memory_space<vmem>>) attributes {dimension_semantics = [#tpu.dimension_semantics<parallel>, #tpu.dimension_semantics<parallel>], iteration_bounds = array<i64: 2, 1>, scalar_prefetch = 0 : i64, scratch_operands = 0 : i64, tpu.core_type = #tpu.core_type<tc>, window_params = [{pipeline_mode = #tpu.pipeline_mode<synchronous>, transform_indices = @transform_0, window_bounds = array<i64: 30, 15>}, {transform_indices = @transform_1, window_bounds = array<i64: 2, 15, 512>}, {transform_indices = @transform_2, window_bounds = array<i64: 2, 30, 512>}]} {
    %c0 = arith.constant 0 : index
    %c0_0 = arith.constant 0 : index
    %0 = vector.load %arg2[%c0, %c0_0] : memref<30x15xf32, #tpu.memory_space<vmem>>, vector<30x15xf32>
    %c0_i32 = arith.constant 0 : i32
    %1 = arith.index_cast %c0_i32 : i32 to index
    %c0_1 = arith.constant 0 : index
    %c0_2 = arith.constant 0 : index
    %2 = vector.load %arg3[%1, %c0_1, %c0_2] : memref<2x15x512xf32, #tpu.memory_space<vmem>>, vector<1x15x512xf32>
    %3 = vector.shape_cast %2 : vector<1x15x512xf32> to vector<15x512xf32>
    %cst = arith.constant dense<0.000000e+00> : vector<30x512xf32>
    %4 = tpu.matmul %0, %3, %cst {dimension_numbers = #tpu.dot_dimension_numbers<[1], [0], [0], [1], [0, 0, 1, 1], [], []>} : vector<30x15xf32>, vector<15x512xf32>, vector<30x512xf32> -> vector<30x512xf32>
    %5 = arith.index_cast %c0_i32 : i32 to index
    %c0_3 = arith.constant 0 : index
    %c0_4 = arith.constant 0 : index
    %6 = vector.load %arg4[%5, %c0_3, %c0_4] : memref<2x30x512xf32, #tpu.memory_space<vmem>>, vector<1x30x512xf32>
    %7 = vector.shape_cast %6 : vector<1x30x512xf32> to vector<30x512xf32>
    %8 = vector.shape_cast %4 : vector<30x512xf32> to vector<1x30x512xf32>
    tpu.vector_store %arg4[%5, %c0_3, %c0_4], %8 {strides = array<i32>} : memref<2x30x512xf32, #tpu.memory_space<vmem>>, vector<1x30x512xf32>,
    %c1_i32 = arith.constant 1 : i32
    %9 = arith.index_cast %c1_i32 : i32 to index
    %c0_5 = arith.constant 0 : index
    %c0_6 = arith.constant 0 : index
    %10 = vector.load %arg3[%9, %c0_5, %c0_6] : memref<2x15x512xf32, #tpu.memory_space<vmem>>, vector<1x15x512xf32>
    %11 = vector.shape_cast %10 : vector<1x15x512xf32> to vector<15x512xf32>
    %cst_7 = arith.constant dense<0.000000e+00> : vector<30x512xf32>
    %12 = tpu.matmul %0, %11, %cst_7 {dimension_numbers = #tpu.dot_dimension_numbers<[1], [0], [0], [1], [0, 0, 1, 1], [], []>} : vector<30x15xf32>, vector<15x512xf32>, vector<30x512xf32> -> vector<30x512xf32>
    %13 = arith.index_cast %c1_i32 : i32 to index
    %c0_8 = arith.constant 0 : index
    %c0_9 = arith.constant 0 : index
    %14 = vector.load %arg4[%13, %c0_8, %c0_9] : memref<2x30x512xf32, #tpu.memory_space<vmem>>, vector<1x30x512xf32>
    %15 = vector.shape_cast %14 : vector<1x30x512xf32> to vector<30x512xf32>
    %16 = vector.shape_cast %12 : vector<30x512xf32> to vector<1x30x512xf32>
    tpu.vector_store %arg4[%13, %c0_8, %c0_9], %16 {strides = array<i32>} : memref<2x30x512xf32, #tpu.memory_space<vmem>>, vector<1x30x512xf32>,
    %c2_i32 = arith.constant 2 : i32
    return
  }
  func.func @transform_0(%arg0: i32, %arg1: i32) -> (i32, i32) {
    %c0_i32 = arith.constant 0 : i32
    %c0_i32_0 = arith.constant 0 : i32
    %c0_i32_1 = arith.constant 0 : i32
    return %c0_i32, %c0_i32_0 : i32, i32
  }
  func.func @transform_1(%arg0: i32, %arg1: i32) -> (i32, i32, i32) {
    %c0_i32 = arith.constant 0 : i32
    %c0_i32_0 = arith.constant 0 : i32
    return %arg0, %c0_i32, %arg1 : i32, i32, i32
  }
  func.func @transform_2(%arg0: i32, %arg1: i32) -> (i32, i32, i32) {
    %c0_i32 = arith.constant 0 : i32
    %c0_i32_0 = arith.constant 0 : i32
    return %arg0, %c0_i32, %arg1 : i32, i32, i32
  }
}

</mosaic_0001>

<bundles_post_ra>
// kernel: tpu_custom_call.1
= control target key start
LH: loop header
LB: loop body
LE: loop exit
PB: predicated region body
PF: predicated region fallthrough
CT: control target
= control target key end

     0   :  { %s883_s9 = smov 0   ;;  %s885_s10 = smov 0   ;;  %s1036_s0 = inlined_call_operand.vmem [shape: f32[30,15], index: 0, kind: input, shape index: {}]   ;;  %s1037_s1 = inlined_call_operand.vmem [shape: f32[4,15,512], index: 1, kind: input, shape index: {}]   ;;  %s1038_s2 = inlined_call_operand.vmem [shape: f32[4,30,512], index: 2, kind: output, shape index: {}]  }
   0x1   :  { %s887_s11 = smov 0  }
   0x2 LB: > { %s24_s12 = sadd.s32 1, %s860_s10  ;;  %p733_p0 = scmp.ge.s32.totalorder %s864_s11, 1  ;;  %s864_s11 = sphi %s887_s11, %s12_s11   ;;  %s860_s10 = sphi %s885_s10, %s1042_s10   ;;  %s856_s9 = sphi %s883_s9, %s1041_s9  }
   0x3   : > { %p26_p1 = scmp.ge.s32.totalorder %s24_s12, 2  ;;  %p135_p2 = scmp.lt.s32.totalorder %s864_s11, 3 }
   0x5   : > { %s1044_s12 = smov (%p26_p1, %s24_s12), 0  ;;  %p136_p3 = pnand %p733_p0, %p135_p2 }
   0x6   : > { %s734_s13 = sshll.u32 (!%p136_p3), %s856_s9, 1  ;;  %v866_v0 = vmov (!%p136_p3), 0.0   ;;  %vm216_vm0 = vcmask (!%p136_p3), 1046528   ;;  %vm867_vm1 = vmmov (!%p136_p3), 1   ;;  %v191_v13 = vld [vmem:[%s1036_s0] sm:$0xff] (!%p136_p3)  ;;  %vm203_vm3 = vcmask (!%p136_p3), 121856  }
   0x7   : > { %139 = sbr.rel (%p136_p3) target bundleno = 268 (0x10c), region = 28  ;;  %p169_p4 = scmp.lt.s32.totalorder (!%p136_p3), %s734_s13, 3  ;;  %293 = vmatprep.mubr.f32.mxu0 (!%p136_p3), %v866_v0  ;;  %382 = vmatprep.mubr.f32.mxu1 (!%p136_p3), %v866_v0  ;;  %vm911_vm2 = vmpackc.low (!%p136_p3), %vm216_vm0, %vm867_vm1  ;;  %v192_v27 = vld [vmem:[%s1036_s0 + $0x8] sm:$0xff] (!%p136_p3)  ;;  %v193_v28 = vld [vmem:[%s1036_s0 + $0x10] sm:$0xff] (!%p136_p3) }
   0x8   : > { %v194_v29 = vld [vmem:[%s1036_s0 + $0x18] sm:$0x3f] (!%p136_p3) }
   0xe   : > { %s1046_s13 = smov (!%p169_p4, %s734_s13), 3 }
   0xf   : > { %s790_s14 = sshll.u32 %s1046_s13, 6  ;;  %s791_s26 = sshll.u32 %s1046_s13, 7 }
  0x10   : > { %s909_s17 = scalar_lea.vmem %s1037_s1, %s790_s14  ;;  %s993_s29 = scalar_lea.vmem %s1038_s2, %s791_s26 }
  0x11   : > { %v196_v2 = vld [vmem:[%s909_s17 + $0x8] sm:$0xff]  ;;  %v198_v4 = vld [vmem:[%s909_s17 + $0x18] sm:$0xff]  ;;  %v195_v7 = vld [vmem:[%s909_s17] sm:$0xff] }
  0x12   : > { %v200_v3 = vld [vmem:[%s909_s17 + $0x28] sm:$0x7f]  ;;  %v202_v6 = vld [vmem:[%s909_s17 + $0x38] sm:$0x7f]  ;;  %v199_v8 = vld [vmem:[%s909_s17 + $0x20] sm:$0x7f] }
  0x13   : > { %v792_v5 = vpack.c.bf16 %v200_v3, %v196_v2  ;;  %v798_v9 = vpack.c.bf16 %v202_v6, %v198_v4  ;;  %v795_v10 = vpack.c.bf16 %v199_v8, %v195_v7  ;;  %v197_v11 = vld [vmem:[%s909_s17 + $0x10] sm:$0xff]  ;;  %v753_v14 = vld [vmem:[%s909_s17 + $0x48] sm:$0xff]  ;;  %v755_v17 = vld [vmem:[%s909_s17 + $0x58] sm:$0xff] }
  0x14   : > { %v201_v12 = vld [vmem:[%s909_s17 + $0x30] sm:$0x7f]  ;;  %v757_v16 = vld [vmem:[%s909_s17 + $0x68] sm:$0x7f]  ;;  %v759_v18 = vld [vmem:[%s909_s17 + $0x78] sm:$0x7f] }
  0x15   : > { %794 = vmatprep.subr.msk.bf16.mxu0 %vm911_vm2, %v792_v5  ;;  %v801_v15 = vpack.c.bf16 %v201_v12, %v197_v11  ;;  %800 = vmatprep.subr.msk.bf16.mxu1 %vm911_vm2, %v798_v9  ;;  %v804_v19 = vpack.c.bf16 %v757_v16, %v753_v14  ;;  %v810_v20 = vpack.c.bf16 %v759_v18, %v755_v17  ;;  %v752_v21 = vld [vmem:[%s909_s17 + $0x40] sm:$0xff]  ;;  %v754_v23 = vld [vmem:[%s909_s17 + $0x50] sm:$0xff] }
  0x16   : > { %797 = vmatpush1.bf16.msk.msra.mxu0 %vm911_vm2, %v795_v10  ;;  %v756_v22 = vld [vmem:[%s909_s17 + $0x60] sm:$0x7f]  ;;  %v758_v25 = vld [vmem:[%s909_s17 + $0x70] sm:$0x7f] }
  0x17   : > { %803 = vmatpush1.bf16.msk.msra.mxu1 %vm911_vm2, %v801_v15  ;;  %v807_v24 = vpack.c.bf16 %v756_v22, %v752_v21  ;;  %806 = vmatprep.subr.msk.bf16.mxu0 %vm911_vm2, %v804_v19  ;;  %v813_v26 = vpack.c.bf16 %v758_v25, %v754_v23 }
  0x18   : > { %812 = vmatprep.subr.msk.bf16.mxu1 %vm911_vm2, %v810_v20 }
  0x19   : > { %742 = vmatmul.mubr.msk.f32.vlgmr.msra.gmra.mrb[0].mxu0 %vm203_vm3, %v191_v13 }
  0x1a   : > { %748 = vmatmul.mubr.msk.f32.vlgmr.msra.gmra.mrb[0].mxu1 %vm203_vm3, %v191_v13  ;;  %809 = vmatpush1.bf16.msk.msra.mxu0 %vm911_vm2, %v807_v24 }
  0x1b   : > { %815 = vmatpush1.bf16.msk.msra.mxu1 %vm911_vm2, %v813_v26  ;;  %299 = vmatprep.mubr.f32.mxu0 %v866_v0 }
  0x1c   : > { %388 = vmatprep.mubr.f32.mxu1 %v866_v0 }
  0x1d   : > { %743 = vmatmul.mubr.msk.f32.gmra.mrb[2].mxu0 %vm203_vm3, %v192_v27 }
  0x1e   : > { %749 = vmatmul.mubr.msk.f32.gmra.mrb[2].mxu1 %vm203_vm3, %v192_v27  ;;  %305 = vmatprep.mubr.f32.mxu0 %v866_v0 }
  0x1f   : > { %394 = vmatprep.mubr.f32.mxu1 %v866_v0 }
  0x21   : > { %744 = vmatmul.mubr.msk.f32.gmra.mrb[4].mxu0 %vm203_vm3, %v193_v28 }
  0x22   : > { %750 = vmatmul.mubr.msk.f32.gmra.mrb[4].mxu1 %vm203_vm3, %v193_v28  ;;  %311 = vmatprep.mubr.f32.mxu0 %v866_v0 }
  0x23   : > { %400 = vmatprep.mubr.f32.mxu1 %v866_v0 }
  0x25   : > { %745 = vmatmul.mubr.msk.f32.gmra.mrb[6].mxu0 %vm203_vm3, %v194_v29 }
  0x26   : > { %751 = vmatmul.mubr.msk.f32.gmra.mrb[6].mxu1 %vm203_vm3, %v194_v29  ;;  %508 = vmatprep.mubr.f32.mxu0 %v866_v0 }
  0x27   : > { %597 = vmatprep.mubr.f32.mxu1 %v866_v0 }
  0x29   : > { %762 = vmatmul.mubr.msk.f32.vlgmr.msra.gmra.mrb[8].mxu0 %vm203_vm3, %v191_v13 }
  0x2a   : > { %768 = vmatmul.mubr.msk.f32.vlgmr.msra.gmra.mrb[8].mxu1 %vm203_vm3, %v191_v13  ;;  %514 = vmatprep.mubr.f32.mxu0 %v866_v0 }
  0x2b   : > { %603 = vmatprep.mubr.f32.mxu1 %v866_v0 }
  0x2d   : > { %763 = vmatmul.mubr.msk.f32.gmra.mrb[10].mxu0 %vm203_vm3, %v192_v27 }
  0x2e   : > { %769 = vmatmul.mubr.msk.f32.gmra.mrb[10].mxu1 %vm203_vm3, %v192_v27  ;;  %520 = vmatprep.mubr.f32.mxu0 %v866_v0 }
  0x2f   : > { %609 = vmatprep.mubr.f32.mxu1 %v866_v0 }
  0x31   : > { %764 = vmatmul.mubr.msk.f32.gmra.mrb[12].mxu0 %vm203_vm3, %v193_v28 }
  0x32   : > { %770 = vmatmul.mubr.msk.f32.gmra.mrb[12].mxu1 %vm203_vm3, %v193_v28  ;;  %526 = vmatprep.mubr.f32.mxu0 %v866_v0 }
  0x33   : > { %615 = vmatprep.mubr.f32.mxu1 %v866_v0 }
  0x35   : > { %765 = vmatmul.mubr.msk.f32.gmra.mrb[14].mxu0 %vm203_vm3, %v194_v29 }
  0x36   : > { %771 = vmatmul.mubr.msk.f32.gmra.mrb[14].mxu1 %vm203_vm3, %v194_v29 }
  0xec   : > { %v295_v30 = vpop.f32.mrb[0].mxu0 }
  0xed   : > { %407 = vst [vmem:[%s993_s29] sm:$0xff] %v295_v30  ;;  %v384_v31 = vpop.f32.mrb[0].mxu1  ;;  %v297_v32 = vpop.f32.mrb[1].mxu0 }
  0xee   : > { %409 = vst [vmem:[%s993_s29 + $0x10] sm:$0xff] %v384_v31  ;;  %408 = vst [vmem:[%s993_s29 + $0x8] sm:$0xff] %v297_v32  ;;  %v386_v33 = vpop.f32.mrb[1].mxu1 }
  0xef   : > { %410 = vst [vmem:[%s993_s29 + $0x18] sm:$0xff] %v386_v33 }
  0xf0   : > { %v301_v34 = vpop.f32.mrb[2].mxu0 }
  0xf1   : > { %411 = vst [vmem:[%s993_s29 + $0x20] sm:$0xff] %v301_v34  ;;  %v390_v35 = vpop.f32.mrb[2].mxu1  ;;  %v303_v36 = vpop.f32.mrb[3].mxu0 }
  0xf2   : > { %413 = vst [vmem:[%s993_s29 + $0x30] sm:$0xff] %v390_v35  ;;  %412 = vst [vmem:[%s993_s29 + $0x28] sm:$0xff] %v303_v36  ;;  %v392_v37 = vpop.f32.mrb[3].mxu1 }
  0xf3   : > { %414 = vst [vmem:[%s993_s29 + $0x38] sm:$0xff] %v392_v37 }
  0xf4   : > { %v307_v38 = vpop.f32.mrb[4].mxu0 }
  0xf5   : > { %415 = vst [vmem:[%s993_s29 + $0x40] sm:$0xff] %v307_v38  ;;  %v396_v39 = vpop.f32.mrb[4].mxu1  ;;  %v309_v40 = vpop.f32.mrb[5].mxu0 }
  0xf6   : > { %417 = vst [vmem:[%s993_s29 + $0x50] sm:$0xff] %v396_v39  ;;  %416 = vst [vmem:[%s993_s29 + $0x48] sm:$0xff] %v309_v40  ;;  %v398_v41 = vpop.f32.mrb[5].mxu1 }
  0xf7   : > { %418 = vst [vmem:[%s993_s29 + $0x58] sm:$0xff] %v398_v41 }
  0xf8   : > { %v313_v42 = vpop.f32.mrb[6].mxu0 }
  0xf9   : > { %419 = vst [vmem:[%s993_s29 + $0x60] sm:$0x3f] %v313_v42  ;;  %v402_v43 = vpop.f32.mrb[6].mxu1  ;;  %v315_v44 = vpop.f32.mrb[7].mxu0 }
  0xfa   : > { %421 = vst [vmem:[%s993_s29 + $0x70] sm:$0x3f] %v402_v43  ;;  %420 = vst [vmem:[%s993_s29 + $0x68] sm:$0x3f] %v315_v44  ;;  %v404_v45 = vpop.f32.mrb[7].mxu1 }
  0xfb   : > { %422 = vst [vmem:[%s993_s29 + $0x78] sm:$0x3f] %v404_v45 }
  0xfc   : > { %v510_v46 = vpop.f32.mrb[8].mxu0 }
  0xfd   : > { %772 = vst [vmem:[%s993_s29 + $0x80] sm:$0xff] %v510_v46  ;;  %v599_v47 = vpop.f32.mrb[8].mxu1  ;;  %v512_v48 = vpop.f32.mrb[9].mxu0 }
  0xfe   : > { %774 = vst [vmem:[%s993_s29 + $0x90] sm:$0xff] %v599_v47  ;;  %773 = vst [vmem:[%s993_s29 + $0x88] sm:$0xff] %v512_v48  ;;  %v601_v49 = vpop.f32.mrb[9].mxu1 }
  0xff   : > { %775 = vst [vmem:[%s993_s29 + $0x98] sm:$0xff] %v601_v49 }
 0x100   : > { %v516_v50 = vpop.f32.mrb[10].mxu0 }
 0x101   : > { %776 = vst [vmem:[%s993_s29 + $0xa0] sm:$0xff] %v516_v50  ;;  %v605_v51 = vpop.f32.mrb[10].mxu1  ;;  %v518_v52 = vpop.f32.mrb[11].mxu0 }
 0x102   : > { %778 = vst [vmem:[%s993_s29 + $0xb0] sm:$0xff] %v605_v51  ;;  %777 = vst [vmem:[%s993_s29 + $0xa8] sm:$0xff] %v518_v52  ;;  %v607_v53 = vpop.f32.mrb[11].mxu1 }
 0x103   : > { %779 = vst [vmem:[%s993_s29 + $0xb8] sm:$0xff] %v607_v53 }
 0x104   : > { %v522_v54 = vpop.f32.mrb[12].mxu0 }
 0x105   : > { %780 = vst [vmem:[%s993_s29 + $0xc0] sm:$0xff] %v522_v54  ;;  %v611_v55 = vpop.f32.mrb[12].mxu1  ;;  %v524_v56 = vpop.f32.mrb[13].mxu0 }
 0x106   : > { %782 = vst [vmem:[%s993_s29 + $0xd0] sm:$0xff] %v611_v55  ;;  %781 = vst [vmem:[%s993_s29 + $0xc8] sm:$0xff] %v524_v56  ;;  %v613_v57 = vpop.f32.mrb[13].mxu1 }
 0x107   : > { %783 = vst [vmem:[%s993_s29 + $0xd8] sm:$0xff] %v613_v57 }
 0x108   : > { %v528_v58 = vpop.f32.mrb[14].mxu0 }
 0x109   : > { %784 = vst [vmem:[%s993_s29 + $0xe0] sm:$0x3f] %v528_v58  ;;  %v617_v59 = vpop.f32.mrb[14].mxu1  ;;  %v530_v60 = vpop.f32.mrb[15].mxu0 }
 0x10a   : > { %786 = vst [vmem:[%s993_s29 + $0xf0] sm:$0x3f] %v617_v59  ;;  %785 = vst [vmem:[%s993_s29 + $0xe8] sm:$0x3f] %v530_v60  ;;  %v619_v61 = vpop.f32.mrb[15].mxu1 }
 0x10b   : > { %787 = vst [vmem:[%s993_s29 + $0xf8] sm:$0x3f] %v619_v61 }
 0x10c PF: > { %s12_s11 = sadd.s32 1, %s864_s11   ;;  %s1041_s9 = smov %s860_s10 }
 0x10d   : > { %p9_p5 = scmp.ge.s32.totalorder %s12_s11, 4   ;;  %s1042_s10 = smov %s1044_s12 }
 0x10f   :  { %11 = sbr.rel (!%p9_p5) target bundleno = 2 (0x2), region = 60 }

</bundles_post_ra>
